<compile_context>
chip_gen: v6e
topology: v6e:2x2x1
jax: 0.10.0
libtpu: 0.0.40
codegen_flags: <defaults>
</compile_context>

<pallas_src>
import jax
import jax.numpy as jnp
from jax import lax
from jax.experimental import pallas as pl
from jax.experimental.pallas import tpu as pltpu


def _attn_head_kernel(x_ref, w_ref, o_ref):
    # x_ref: (Bb, T, C); w_ref: (C, 3*Hp) = [Wk^T*1 | Wq^T*scale | Wv^T], zero-padded
    # per section to Hp lanes; o_ref: (Bb, T, Hp).
    bb, t, c = x_ref.shape
    hp3 = w_ref.shape[1]
    hp = hp3 // 3
    mm_dtype = w_ref.dtype                        # bf16 MXU path when caller is f32

    x = x_ref[...].astype(mm_dtype)               # (Bb, T, C)
    w = w_ref[...]                                # (C, 3*Hp)

    # Fused QKV projection: one MXU pass, M = Bb*T, N = 3*Hp, f32 accumulation.
    kqv = jnp.dot(x.reshape(bb * t, c), w,
                  preferred_element_type=jnp.float32)            # (Bb*T, 3*Hp) f32
    kqv = kqv.reshape(bb, t, hp3).astype(mm_dtype)               # back to MXU dtype
    # Slices at 128-lane-aligned offsets (0, Hp, 2*Hp) — no relayout copies.
    k = kqv[:, :, 0:hp]
    q = kqv[:, :, hp:2 * hp]
    v = kqv[:, :, 2 * hp:3 * hp]

    # scores = q_scaled @ k^T (batched, contracting on the padded head dim; the
    # zero-padded columns contribute nothing).  Scale already folded into Wq.
    s = jnp.einsum('bqd,bkd->bqk', q, k,
                   preferred_element_type=jnp.float32)           # (Bb, T, T) f32

    # Causal (lower-triangular) mask, built once in 2-D and broadcast over Bb.
    row = lax.broadcasted_iota(jnp.int32, (t, t), 0)
    col = lax.broadcasted_iota(jnp.int32, (t, t), 1)
    s = jnp.where((col <= row)[None, :, :], s, -jnp.inf)

    # Numerically-stable softmax in f32; exact divide on the (Bb,T,1) denominator.
    m = jnp.max(s, axis=-1, keepdims=True)
    e = jnp.exp(s - m)
    denom = jnp.sum(e, axis=-1, keepdims=True)
    p = e * (1.0 / denom)                                        # (Bb, T, T) f32

    # dropout(p=0.1): eval-mode identity (see TODO above).

    out = jnp.einsum('bqk,bkd->bqd', p.astype(mm_dtype), v,
                     preferred_element_type=jnp.float32)         # (Bb, T, Hp) f32
    o_ref[...] = out.astype(o_ref.dtype)                         # lane-dense store


def _pick_bb(B, T, C, Hp, mm_itemsize, out_itemsize):
    """Largest batch tile such that the grid has >=2 steps (when B>=2), the fused
    matmul has <=512 rows, and a conservative per-step VMEM budget holds."""
    best = 1
    for cand in range(1, B + 1):
        if B % cand != 0:
            continue
        if B >= 2 and B // cand < 2:          # keep both v7x TCs / pipelining busy
            continue
        if cand * T > 512:                    # amortize ~0.35us/step, bounded tiles
            continue
        vmem = (2 * cand * T * C * mm_itemsize        # double-buffered x
                + 2 * cand * T * Hp * out_itemsize    # double-buffered (padded) out
                + cand * T * 3 * Hp * 4               # kqv f32 accumulator
                + 3 * cand * T * T * 4)               # scores / exp / prob f32 temps
        if vmem > 16 * 1024 * 1024:           # conservative (v5e default scoped VMEM)
            continue
        best = cand
    return best


def self_attention_head(x, w_key, w_query, w_value):
    """x: (B, T, C); w_*: (H, C) in PyTorch nn.Linear convention (no bias)."""
    B, T, C = x.shape
    H = w_key.shape[0]

    # bf16 MXU inputs for f32 callers (f32 accumulation preserved in-kernel).
    mm_dtype = jnp.bfloat16 if x.dtype == jnp.float32 else x.dtype

    # Pad each section to a 128-lane boundary and fold the 1/sqrt(C) scale into Wq.
    Hp = max(128, ((H + 127) // 128) * 128)
    scale = 1.0 / float(C) ** 0.5

    def _pad(w_t):                             # (C, H) -> (C, Hp), zero-padded lanes
        return jnp.pad(w_t, ((0, 0), (0, Hp - H)))

    w_kqv = jnp.concatenate(
        [_pad(w_key.T), _pad(w_query.T * scale), _pad(w_value.T)],
        axis=1).astype(mm_dtype)               # (C, 3*Hp)

    bb = _pick_bb(B, T, C, Hp,
                  mm_itemsize=jnp.dtype(mm_dtype).itemsize,
                  out_itemsize=jnp.dtype(x.dtype).itemsize)

    grid_spec = pltpu.PrefetchScalarGridSpec(
        num_scalar_prefetch=0,
        grid=(B // bb,),
        in_specs=[
            pl.BlockSpec((bb, T, C), lambda b: (b, 0, 0)),       # x: Bb batch rows/step
            pl.BlockSpec((C, 3 * Hp), lambda b: (0, 0)),         # fused [Wk|Wq*s|Wv]^T
        ],
        out_specs=pl.BlockSpec((bb, T, Hp), lambda b: (b, 0, 0)),
    )

    out_padded = pl.pallas_call(
        _attn_head_kernel,
        out_shape=jax.ShapeDtypeStruct((B, T, Hp), x.dtype),
        grid_spec=grid_spec,
        compiler_params=pltpu.CompilerParams(
            dimension_semantics=("parallel",),
        ),
    )(x, w_kqv)

    return out_padded[:, :, :H]


def _reference(x, w_key, w_query, w_value):
    """Pure-JAX reference mirroring the PyTorch forward (eval mode)."""
    B, T, C = x.shape
    k = x @ w_key.T
    q = x @ w_query.T
    v = x @ w_value.T
    wei = (q @ jnp.swapaxes(k, -2, -1)) / (C ** 0.5)
    tril = jnp.tril(jnp.ones((T, T), dtype=bool))
    wei = jnp.where(tril, wei, -jnp.inf)
    wei = jax.nn.softmax(wei, axis=-1)
    return wei @ v


if __name__ == "__main__":
    # small shapes consistent with the module
    B, T = 2, 8                # batch, sequence length (== block_size)
    embed_size = 32            # C
    head_size = 16             # H

    key = jax.random.PRNGKey(0)
    kx, kk, kq, kv = jax.random.split(key, 4)

    x = jax.random.normal(kx, (B, T, embed_size), dtype=jnp.float32)
    # nn.Linear(embed_size, head_size, bias=False) -> weight shape (head_size, embed_size)
    bound = 1.0 / (embed_size ** 0.5)
    w_key = jax.random.uniform(kk, (head_size, embed_size), jnp.float32, -bound, bound)
    w_query = jax.random.uniform(kq, (head_size, embed_size), jnp.float32, -bound, bound)
    w_value = jax.random.uniform(kv, (head_size, embed_size), jnp.float32, -bound, bound)

    out = self_attention_head(x, w_key, w_query, w_value)
    out = jax.block_until_ready(out)

    ref = _reference(x, w_key, w_query, w_value)
    assert out.shape == (B, T, head_size)
    # tolerance accounts for bf16 MXU inputs (f32 accumulation, exact f32 softmax)
    assert jnp.allclose(out, ref, atol=2e-2, rtol=2e-2), "mismatch vs reference"

    print("KERNEL_OK")
</pallas_src>

<mosaic_0001>
module attributes {stable_mosaic.version = 11 : i64} {
  func.func @_attn_head_kernel(%arg0: i32, %arg1: memref<1x8x32xf32, #tpu.memory_space<vmem>>, %arg2: memref<32x384xbf16, #tpu.memory_space<vmem>>, %arg3: memref<1x8x128xf32, #tpu.memory_space<vmem>>) attributes {dimension_semantics = [#tpu.dimension_semantics<parallel>], iteration_bounds = array<i64: 2>, scalar_prefetch = 0 : i64, scratch_operands = 0 : i64, tpu.core_type = #tpu.core_type<tc>, window_params = [{transform_indices = @transform_0, window_bounds = array<i64: 1, 8, 32>}, {pipeline_mode = #tpu.pipeline_mode<synchronous>, transform_indices = @transform_1, window_bounds = array<i64: 32, 384>}, {transform_indices = @transform_2, window_bounds = array<i64: 1, 8, 128>}]} {
    %c0 = arith.constant 0 : index
    %c0_0 = arith.constant 0 : index
    %c0_1 = arith.constant 0 : index
    %0 = vector.load %arg1[%c0, %c0_0, %c0_1] : memref<1x8x32xf32, #tpu.memory_space<vmem>>, vector<1x8x32xf32>
    %1 = arith.truncf %0 : vector<1x8x32xf32> to vector<1x8x32xbf16>
    %c0_2 = arith.constant 0 : index
    %c0_3 = arith.constant 0 : index
    %2 = vector.load %arg2[%c0_2, %c0_3] : memref<32x384xbf16, #tpu.memory_space<vmem>>, vector<32x384xbf16>
    %3 = vector.shape_cast %1 : vector<1x8x32xbf16> to vector<8x32xbf16>
    %cst = arith.constant dense<0.000000e+00> : vector<8x384xf32>
    %4 = tpu.matmul %3, %2, %cst {dimension_numbers = #tpu.dot_dimension_numbers<[1], [0], [0], [1], [0, 0, 1, 1], [], []>} : vector<8x32xbf16>, vector<32x384xbf16>, vector<8x384xf32> -> vector<8x384xf32>
    %5 = vector.shape_cast %4 : vector<8x384xf32> to vector<1x8x384xf32>
    %6 = arith.truncf %5 : vector<1x8x384xf32> to vector<1x8x384xbf16>
    %7 = vector.extract_strided_slice %6 {offsets = [0, 0, 0], sizes = [1, 8, 128], strides = [1, 1, 1]} : vector<1x8x384xbf16> to vector<1x8x128xbf16>
    %8 = vector.extract_strided_slice %6 {offsets = [0, 0, 128], sizes = [1, 8, 128], strides = [1, 1, 1]} : vector<1x8x384xbf16> to vector<1x8x128xbf16>
    %9 = vector.extract_strided_slice %6 {offsets = [0, 0, 256], sizes = [1, 8, 128], strides = [1, 1, 1]} : vector<1x8x384xbf16> to vector<1x8x128xbf16>
    "tpu.trace_start"() <{level = 10 : i32, message = "bqd,bkd->bqk"}> : () -> ()
    %cst_4 = arith.constant dense<0.000000e+00> : vector<1x8x8xf32>
    %10 = tpu.matmul %8, %7, %cst_4 {dimension_numbers = #tpu.dot_dimension_numbers<[2], [2], [1], [1], [0, 0, 0, 1, 1, 1], [0], [0]>} : vector<1x8x128xbf16>, vector<1x8x128xbf16>, vector<1x8x8xf32> -> vector<1x8x8xf32>
    "tpu.trace_stop"() : () -> ()
    %11 = tpu.iota {dimensions = array<i32: 0>} : vector<8x8xi32>
    %12 = tpu.iota {dimensions = array<i32: 1>} : vector<8x8xi32>
    %13 = arith.cmpi sle, %12, %11 : vector<8x8xi32>
    %14 = vector.shape_cast %13 : vector<8x8xi1> to vector<1x8x8xi1>
    %cst_5 = arith.constant 0xFF800000 : f32
    %15 = vector.broadcast %cst_5 : f32 to vector<1x8x8xf32>
    %16 = arith.select %14, %10, %15 : vector<1x8x8xi1>, vector<1x8x8xf32>
    %cst_6 = arith.constant dense<0xFF800000> : vector<1x8xf32>
    %17 = vector.multi_reduction <maximumf>, %16, %cst_6 [2] : vector<1x8x8xf32> to vector<1x8xf32>
    %18 = vector.shape_cast %17 : vector<1x8xf32> to vector<1x8x1xf32>
    %19 = vector.broadcast %18 : vector<1x8x1xf32> to vector<1x8x8xf32>
    %20 = arith.subf %16, %19 : vector<1x8x8xf32>
    %21 = math.exp %20 : vector<1x8x8xf32>
    %cst_7 = arith.constant dense<0.000000e+00> : vector<1x8xf32>
    %22 = vector.multi_reduction <add>, %21, %cst_7 [2] : vector<1x8x8xf32> to vector<1x8xf32>
    %23 = vector.shape_cast %22 : vector<1x8xf32> to vector<1x8x1xf32>
    %cst_8 = arith.constant 1.000000e+00 : f32
    %24 = vector.broadcast %cst_8 : f32 to vector<1x8x1xf32>
    %25 = arith.divf %24, %23 : vector<1x8x1xf32>
    %26 = vector.broadcast %25 : vector<1x8x1xf32> to vector<1x8x8xf32>
    %27 = arith.mulf %21, %26 : vector<1x8x8xf32>
    %28 = arith.truncf %27 : vector<1x8x8xf32> to vector<1x8x8xbf16>
    "tpu.trace_start"() <{level = 10 : i32, message = "bqk,bkd->bqd"}> : () -> ()
    %cst_9 = arith.constant dense<0.000000e+00> : vector<1x8x128xf32>
    %29 = tpu.matmul %28, %9, %cst_9 {dimension_numbers = #tpu.dot_dimension_numbers<[2], [1], [1], [2], [0, 0, 0, 1, 1, 2], [0], [0]>} : vector<1x8x8xbf16>, vector<1x8x128xbf16>, vector<1x8x128xf32> -> vector<1x8x128xf32>
    "tpu.trace_stop"() : () -> ()
    %c0_10 = arith.constant 0 : index
    %c0_11 = arith.constant 0 : index
    %c0_12 = arith.constant 0 : index
    %30 = vector.load %arg3[%c0_10, %c0_11, %c0_12] : memref<1x8x128xf32, #tpu.memory_space<vmem>>, vector<1x8x128xf32>
    tpu.vector_store %arg3[%c0_10, %c0_11, %c0_12], %29 {strides = array<i32>} : memref<1x8x128xf32, #tpu.memory_space<vmem>>, vector<1x8x128xf32>,
    return
  }
  func.func @transform_0(%arg0: i32) -> (i32, i32, i32) {
    %c0_i32 = arith.constant 0 : i32
    %c0_i32_0 = arith.constant 0 : i32
    %c0_i32_1 = arith.constant 0 : i32
    return %arg0, %c0_i32, %c0_i32_0 : i32, i32, i32
  }
  func.func @transform_1(%arg0: i32) -> (i32, i32) {
    %c0_i32 = arith.constant 0 : i32
    %c0_i32_0 = arith.constant 0 : i32
    %c0_i32_1 = arith.constant 0 : i32
    return %c0_i32, %c0_i32_0 : i32, i32
  }
  func.func @transform_2(%arg0: i32) -> (i32, i32, i32) {
    %c0_i32 = arith.constant 0 : i32
    %c0_i32_0 = arith.constant 0 : i32
    %c0_i32_1 = arith.constant 0 : i32
    return %arg0, %c0_i32, %c0_i32_0 : i32, i32, i32
  }
}

</mosaic_0001>

<bundles_post_ra>
// kernel: tpu_custom_call.1
= control target key start
LH: loop header
LB: loop body
LE: loop exit
PB: predicated region body
PF: predicated region fallthrough
CT: control target
= control target key end

     0   :  { %7 = vsyncpa [#allocation3], 0  ;;  %s956_s0 = inlined_call_operand.hbm [shape: f32[2,8,32], index: 0, kind: input, shape index: {}]   ;;  %s957_s1 = inlined_call_operand.hbm [shape: bf16[32,384], index: 1, kind: input, shape index: {}]   ;;  %s958_s2 = inlined_call_operand.hbm [shape: f32[2,8,128], index: 2, kind: output, shape index: {}]  }
   0x1   :  { %9 = vsyncpa [#allocation3 + $0x1], 0 }
   0x2   :  { %10 = vsyncpa [#allocation6], 0 }
   0x3   :  { %11 = vsyncpa [#allocation4], 0 }
   0x4   :  { %13 = vsyncpa [#allocation4 + $0x1], 0  ;;  %s778_s9 = smov 0   ;;  %s780_s10 = smov 0  }
   0x5   :  { %s782_s11 = smov 0   ;;  %s784_s12 = smov 0  }
   0x6 LB: > { %s799_s13 = sadd.s32 4294967295, %s753_s12   ;;  %s507_s14 = sadd.s32 4294967294, %s753_s12   ;;  %s753_s12 = sphi %s784_s12, %s980_s12   ;;  %s749_s11 = sphi %s782_s11, %s979_s11   ;;  %s745_s10 = sphi %s780_s10, %s978_s10   ;;  %s741_s9 = sphi %s778_s9, %s977_s9  }
   0x7   : > { %p39_p0 = scmp.ne.s32.totalorder %s745_s10, %s741_s9  ;;  %p959_p1 = scmp.eq.s32.totalorder %s799_s13, 0 }
   0x8   : > { %p90_p3 = scmp.eq.s32.totalorder %s507_s14, 1  ;;  %p508_p5 = scmp.ge.s32.totalorder %s753_s12, 1 }
   0x9   : > { %p808_p4 = por %p959_p1, %p39_p0  ;;  %p97_p7 = scmp.lt.s32.totalorder %s753_s12, 3 }
   0xa   : > { %p813_p6 = por %p90_p3, %p39_p0  ;;  %s755_s18 = smov [#allocation5]  }
   0xb   : > { %s963_s15 = scalar_select %p808_p4, 1, 0 }
   0xc   : > { %s964_s16 = scalar_select %p813_p6, 1, 0 }
   0xd   : > { %p818_p8 = pnand %p508_p5, %p97_p7  ;;  %s109_s19 = sshll.u32 %s755_s18, 4  ;;  %s110_s19 = int_to_ptr.vmem [resolvable:$true] %s109_s19 }
   0xe   : > { %s832_s21 = sadd.s32 1, %s753_s12   ;;  %s26_s22 = sadd.s32 1, %s749_s11 }
   0xf   : > { %s965_s17 = scalar_select %p818_p8, 1, 0 }
  0x10   : > { %p565_p9 = pneg %p818_p8  ;;  %s23_s23 = ssub.s32 %s753_s12, %s832_s21 }
  0x11   : > { %s642_s24 = scalar_lea.vmem %s110_s19, 768  ;;  %p650_p5 = scmp.lt.s32.totalorder %s110_s19, %s110_s19 }
  0x12   : > { %p827_p11 = pnand %p565_p9, %p959_p1  ;;  %p643_p13 = scmp.ne.s32.totalorder %s110_s19, %s642_s24 }
  0x13   : > { %p651_p7 = scmp.lt.s32.totalorder %s642_s24, %s642_s24 }
  0x14   : > { %p633_p12 = pneg %p827_p11 }
  0x15   : > { %p652_p10 = por %p651_p7, %p650_p5 }
  0x16   : > { %p645_p0 = pnand %p643_p13, %p633_p12 }
  0x18   : > { %p646_p3 = pneg %p645_p0 }
  0x1a   : > { %p653_p2 = pnand %p652_p10, %p646_p3 }
  0x1c   : > { %656 = shalt.err (!%p653_p2)
}
  0x1d   : > { %s756_s25 = smov 192   ;;  %s757_s26 = smov 12  }
  0x1e   : > { %568 = dma.hbm_to_vmem [thread:$0]  (!%p827_p11), %s957_s1, 768, %s110_s19, [#allocation6], %s756_s25, %s756_s25, %s757_s26  }
  0x1f   : > { %p24_p9 = scmp.eq.s32.totalorder %s23_s23, 0  ;;  %p33_p12 = scmp.ne.s32.totalorder %s749_s11, %s745_s10 }
  0x20   : > { %p34_p10 = scmp.eq.s32.totalorder %s753_s12, 0  ;;  %p578_p2 = scmp.lt.s32.totalorder %s753_s12, 2 }
  0x21   : > { %s849_s29 = scalar_select %p24_p9, %s749_s11, %s26_s22  }
  0x22   : > { %p35_p13 = por %p34_p10, %p33_p12  ;;  %p967_p0 = scmp.eq.s32.totalorder %s799_s13, 1 }
  0x23   : > { %s123_s3 = sand.u32 1, %s749_s11   ;;  %s512_s4 = sshll.u32 %s753_s12, 7 }
  0x24   : > { %p853_p3 = por %p967_p0, %p33_p12  ;;  %s511_s5 = sshll.u32 %s123_s3, 3 }
  0x25   : > { %s862_s8 = scalar_lea.hbm %s956_s0, %s512_s4  ;;  %s127_s14 = scalar_lea.vmem [#allocation2], %s511_s5 }
  0x26   : > { %s968_s30 = scalar_select %p853_p3, 1, 0 }
  0x27   : > { %s134_s18 = sshll.u32 %s127_s14, 4  ;;  %p864_p11 = pnand %p578_p2, %p35_p13  ;;  %s135_s18 = int_to_ptr.vmem [resolvable:$true] %s134_s18 }
  0x28   : > { %s124_s20 = scalar_lea.sflag [#allocation3], %s123_s3  ;;  %s657_s22 = scalar_lea.hbm %s862_s8, 128 }
  0x29   : > { %p658_p5 = scmp.ne.s32.totalorder %s862_s8, %s657_s22  ;;  %p659_p7 = pneg %p864_p11 }
  0x2a   : > { %s662_s25 = scalar_lea.hbm %s956_s0, 256  ;;  %p663_p10 = scmp.lt.s32.totalorder %s862_s8, %s956_s0 }
  0x2b   : > { %p660_p9 = pnand %p659_p7, %p658_p5  ;;  %p664_p2 = scmp.lt.s32.totalorder %s662_s25, %s657_s22 }
  0x2d   : > { %p661_p12 = pneg %p660_p9  ;;  %p665_p13 = por %p664_p2, %p663_p10 }
  0x2f   : > { %p666_p0 = pnand %p665_p13, %p661_p12 }
  0x31   : > { %669 = shalt.err (!%p666_p0)
}
  0x32   : > { %s670_s28 = scalar_lea.vmem %s135_s18, 128  ;;  %s758_s3 = smov [#allocation2]  }
  0x33   : > { %p671_p1 = scmp.ne.s32.totalorder %s135_s18, %s670_s28  ;;  %s675_s4 = sshll.u32 %s758_s3, 4  ;;  %s676_s4 = int_to_ptr.vmem [resolvable:$false] %s675_s4 }
  0x34   : > { %s677_s5 = scalar_lea.vmem %s676_s4, 256  ;;  %p678_p5 = scmp.lt.s32.totalorder %s135_s18, %s676_s4 }
  0x35   : > { %p673_p6 = pnand %p671_p1, %p659_p7  ;;  %p679_p9 = scmp.lt.s32.totalorder %s677_s5, %s670_s28 }
  0x37   : > { %p674_p3 = pneg %p673_p6  ;;  %p680_p4 = por %p679_p9, %p678_p5 }
  0x39   : > { %p681_p8 = pnand %p680_p4, %p674_p3 }
  0x3b   : > { %684 = shalt.err (!%p681_p8)
}
  0x3c   : > { %572 = dma.hbm_to_vmem [thread:$0]  (!%p864_p11), %s862_s8, 128, %s135_s18, %s124_s20  }
  0x3d   : > { %p970_p12 = scmp.ne.s32.totalorder %s965_s17, 0 }
  0x3e   : > { %s885_s6 = sand.u32 (!%p970_p12), 1, %s745_s10   ;;  %p971_p1 = scmp.ne.s32.totalorder (!%p970_p12), %s963_s15, 0 }
  0x3f   : > { %143 = sbr.rel (%p970_p12) target bundleno = 1000 (0x3e8), region = 28  ;;  %s514_s7 = sshll.u32 (!%p970_p12), %s885_s6, 3 }
  0x40   : > { %s146_s14 = scalar_lea.sflag (!%p970_p12), [#allocation3], %s885_s6  ;;  %s149_s22 = scalar_lea.vmem (!%p970_p12), [#allocation2], %s514_s7 }
  0x44   : > { %728 = dma.done.wait (%p971_p1), %s146_s14, 128  }
  0x45   : > { %730 = vsyncadd (%p971_p1), %s146_s14, 4294967168  ;;  %p972_p4 = scmp.eq.s32.totalorder %s799_s13, 0 }
  0x47   : > { %732 = dma.done.wait (%p972_p4), [#allocation6], 768   ;;  %p973_p6 = pmov %p972_p4 }
  0x48   : > { %v759_v0 = vmov 0   ;;  %v619_v1 = vld [vmem:[#allocation5 + $0x1c] ss:$12 sps:$4 sm:$0xff]   ;;  %v621_v2 = vld [vmem:[#allocation5 + $0x18] ss:$12 sps:$4 sm:$0xff]   ;;  %vm217_vm0 = vcmask 261120   ;;  %v345_v16 = vlaneseq }
  0x49   : > { %734 = vsyncadd (%p973_p6), [#allocation6], 4294966528  ;;  %253 = vmatprep.mubr.bf16.mxu0 %v759_v0  ;;  %233 = vmatprep.subr.bf16.mxu0 %v619_v1  ;;  %v622_v3 = vld [vmem:[#allocation5 + $0x4] ss:$12 sps:$4 sm:$0xff]   ;;  %v624_v4 = vld [vmem:[#allocation5] ss:$12 sps:$4 sm:$0xff]  }
  0x4a   : > { %v175_v5 = vld [vmem:[%s149_s22] sm:$0xff]  ;;  %234 = vmatpush1.bf16.msra.mxu0 %v621_v2  ;;  %v760_v7 = vmov 0.0   ;;  %vm761_vm1 = vmmov 0   ;;  %v625_v14 = vld [vmem:[#allocation5 + $0x20] ss:$12 sps:$4 sm:$0xff]   ;;  %v346_v17 = vshrl.u32 %v345_v16, 7 }
  0x4b   : > { %235 = vmatprep.subr.bf16.mxu0 %v622_v3  ;;  %v176_v6 = vpack.c.bf16 %v175_v5, %v175_v5  ;;  %537 = vmatprep.subr.bf16.mxu1 %v760_v7  ;;  %v626_v15 = vld [vmem:[#allocation5 + $0x8] ss:$12 sps:$4 sm:$0xff]   ;;  %v348_v18 = vand.u32 127, %v345_v16  ;;  %vm351_vm3 = vcmask 64512   ;;  %vm368_vm4 = vcmask 1043456   ;;  %s173_s15 = scalar_lea.vmem [#allocation7], %s514_s7 }
  0x4c   : > { %541 = vmatprep.mubr.msk.bf16.mxu1 %vm761_vm1, %v760_v7  ;;  %538 = vmatpush3.bf16.msra.mxu1 %v625_v14  ;;  %s427_s17 = sshll.u32 %s173_s15, 4  ;;  %s527_s8 = sshll.u32 %s799_s13, 7  ;;  %s910_s17 = int_to_ptr.vmem [resolvable:$true] %s427_s17 }
  0x4d   : > { %539 = vmatprep.subr.bf16.mxu1 %v760_v7  ;;  %vm349_vm2 = vcmp.le.s32.totalorder %v348_v18, %v346_v17  ;;  %s915_s20 = scalar_lea.hbm %s958_s2, %s527_s8  ;;  %s414_s23 = scalar_lea.sflag [#allocation4], %s885_s6 }
  0x4e   : > { %236 = vmatpush1.bf16.msra.mxu0 %v624_v4  ;;  %s685_s24 = scalar_lea.vmem %s910_s17, 128  ;;  %p974_p3 = scmp.ne.s32.totalorder %s968_s30, 0 }
  0x4f   : > { %545 = vmatprep.subr.bf16.mxu0 %v760_v7  ;;  %p686_p8 = scmp.ne.s32.totalorder %s910_s17, %s685_s24  ;;  %s762_s13 = smov [#allocation7]  }
  0x50   : > { %540 = vmatpush3.bf16.msra.mxu1 %v626_v15  ;;  %s689_s25 = sshll.u32 %s762_s13, 4  ;;  %s690_s25 = int_to_ptr.vmem [resolvable:$false] %s689_s25 }
  0x51   : > { %523 = vmatmul.mubr.msk.bf16.vlgmr.msra.gmra.mxu0 %vm217_vm0, %v176_v6  ;;  %551 = vmatprep.subr.bf16.mxu1 %v760_v7  ;;  %p687_p11 = pnand %p686_p8, %p974_p3  ;;  %s691_s26 = scalar_lea.vmem %s690_s25, 256 }
  0x52   : > { %547 = vmatprep.mubr.msk.bf16.mxu0 %vm761_vm1, %v760_v7  ;;  %p692_p10 = scmp.lt.s32.totalorder %s910_s17, %s690_s25  ;;  %p693_p2 = scmp.lt.s32.totalorder %s691_s26, %s685_s24 }
  0x53   : > { %542 = vmatmul.mubr.msk.bf16.vlgmr.msra.gmra.mxu1 %vm217_vm0, %v176_v6  ;;  %p688_p7 = pneg %p687_p11 }
  0x54   : > { %553 = vmatprep.mubr.msk.bf16.mxu1 %vm761_vm1, %v760_v7  ;;  %p694_p13 = por %p693_p2, %p692_p10 }
  0x56   : > { %p695_p0 = pnand %p694_p13, %p688_p7 }
 0x111   : > { %v255_v8 = vpop.f32.mrf.mxu0 }
 0x112   : > { %v302_v9 = vpack.c.bf16 %v255_v8, %v255_v8 }
 0x113   : > { %v257_v10 = vpop.f32.mrf.mxu0  ;;  %v296_v30 = vpop.f32.mrf.mxu1 }
 0x114   : > { %546 = vmatpush3.bf16.xpose.msra.mxu0 %v302_v9  ;;  %v303_v13 = vpack.c.bf16 %v257_v10, %v257_v10  ;;  %v304_v31 = vpack.c.bf16 %v296_v30, %v296_v30 }
 0x115   : > { %v259_v11 = vpop.f32.mrf.mxu0  ;;  %v543_v32 = vpop.f32.mrf.mxu1 }
 0x116   : > { %v370_v33 = vsel %vm368_vm4, %v304_v31, 0 }
 0x117   : > { %v260_v12 = vpop.f32.mrf.mxu0  ;;  %v299_v34 = vpop.f32.mrf.mxu1  ;;  %552 = vmatpush3.bf16.msra.mxu1 %v370_v33 }
 0x119   : > { %v544_v35 = vpop.f32.mrf.mxu1 }
 0x11b   : > { %548 = vmatmul.mubr.bf16.vlgmr.msra.gmra.mxu0 %v303_v13 }
 0x1db   : > { %v339_v19 = vpop.f32.mrf.mxu0 }
 0x1dc   : > { %v350_v20 = vsel %vm349_vm2, %v339_v19, -inf }
 0x1dd   : > { %v549_v21 = vpop.f32.mrf.mxu0  ;;  %v352_v22 = vsel %vm351_vm3, %v350_v20, -inf }
 0x1de   : > { %353 = vmax.xlane.f32.xlu0 %v352_v22 }
 0x1df   : > { %v342_v23 = vpop.f32.mrf.mxu0 }
 0x1e1   : > { %v550_v24 = vpop.f32.mrf.mxu0 }
 0x267   : > { %v354_v25 = vpop.xlane.xlu0 %353 }
 0x268   : > { %v355_v26 = vsub.f32 %v350_v20, %v354_v25 }
 0x26a   : > { %v356_v27 = vmul.f32 1.442695, %v355_v26 }
 0x26c   : > { %627 = vpow2.f32 %v356_v27 }
 0x279   : > { %v628_v28 = vpop.eup %627 }
 0x27a   : > { %v358_v29 = vsel %vm351_vm3, %v628_v28, 0.0 }
 0x27b   : > { %359 = vadd.xlane.f32.xlu0 %v358_v29 }
 0x304   : > { %v360_v36 = vpop.xlane.xlu0 %359 }
 0x305   : > { %629 = vrcp.f32 %v360_v36 }
 0x312   : > { %v630_v37 = vpop.eup %629 }
 0x313   : > { %v363_v38 = vmul.f32 %v630_v37, %v628_v28 }
 0x315   : > { %v364_v39 = vpack.c.bf16 %v363_v38, %v363_v38 }
 0x317   : > { %554 = vmatmul.mubr.msk.bf16.vlgmr.msra.gmra.mxu1 %vm351_vm3, %v364_v39 }
 0x3d7   : > { %v406_v40 = vpop.f32.mrf.mxu1 }
 0x3d8   : > { %412 = vst [vmem:[%s173_s15] sm:$0xff] %v406_v40 }
 0x3d9   : > { %v555_v41 = vpop.f32.mrf.mxu1 }
 0x3da   : > { %698 = shalt.err (!%p695_p0)
}
 0x3db   : > { %s699_s27 = scalar_lea.hbm %s915_s20, 128  ;;  %s703_s4 = scalar_lea.hbm %s958_s2, 256 }
 0x3dc   : > { %p700_p5 = scmp.ne.s32.totalorder %s915_s20, %s699_s27  ;;  %p704_p1 = scmp.lt.s32.totalorder %s915_s20, %s958_s2 }
 0x3dd   : > { %p705_p4 = scmp.lt.s32.totalorder %s703_s4, %s699_s27 }
 0x3de   : > { %p701_p9 = pnand %p700_p5, %p974_p3 }
 0x3df   : > { %p706_p6 = por %p705_p4, %p704_p1 }
 0x3e0   : > { %p702_p12 = pneg %p701_p9 }
 0x3e2   : > { %p707_p8 = pnand %p706_p6, %p702_p12 }
 0x3e4   : > { %710 = shalt.err (!%p707_p8)
}
 0x3e5   : > { %563 = dma.vmem_to_hbm [thread:$0]  (%p974_p3), %s910_s17, 128, %s915_s20, %s414_s23   ;;  %v409_v42 = vpop.f32.mrf.mxu1 }
 0x3e7   : > { %v556_v43 = vpop.f32.mrf.mxu1 }
 0x3e8 PF: > { %s439_s7 = sand.u32 1, %s741_s9   ;;  %p975_p11 = scmp.ne.s32.totalorder %s964_s16, 0 }
 0x3e9   : > { %p976_p7 = scmp.ge.s32.totalorder %s753_s12, 2  ;;  %s440_s14 = scalar_lea.sflag [#allocation4], %s439_s7 }
 0x3eb   : > { %p574_p10 = pnand %p976_p7, %p975_p11 }
 0x3ed   : > { %p575_p2 = pneg %p574_p10 }
 0x3ef   : > { %736 = dma.done.wait (%p575_p2), %s440_s14, 128  }
 0x3f0   : > { %738 = vsyncadd (%p575_p2), %s440_s14, 4294967168  ;;  %p16_p3 = scmp.ge.s32.totalorder %s832_s21, 4   ;;  %s977_s9 = smov %s745_s10 }
 0x3f1   : > { %s978_s10 = smov %s749_s11  ;;  %s979_s11 = smov %s849_s29 }
 0x3f2   : > { %s980_s12 = smov %s832_s21  ;;  %18 = sbr.rel (!%p16_p3) target bundleno = 6 (0x6), region = 77 }
 0x3f7   :  { %445 = vsyncpa [#allocation3], 1 }
 0x3f8   :  { %447 = vsyncpa [#allocation3 + $0x1], 1 }
 0x3f9   :  { %448 = vsyncpa [#allocation6], 1 }
 0x3fa   :  { %449 = vsyncpa [#allocation4], 1 }
 0x3fb   :  { %451 = vsyncpa [#allocation4 + $0x1], 1 }

</bundles_post_ra>
